<compile_context>
chip_gen: v7x
topology: tpu7x:2x2x1
jax: 0.10.0
libtpu: 0.0.40
codegen_flags: <defaults>
</compile_context>

<pallas_src>
import jax
import jax.numpy as jnp
import numpy as np
from jax.experimental import pallas as pl
from jax.experimental.pallas import tpu as pltpu


def _round_up(x, m):
    return ((x + m - 1) // m) * m


def _pick_tile(n, candidates):
    for c in candidates:
        if c <= n and n % c == 0:
            return c
    return n


# --------------------------------------------------------------------------- #
# Kernel 1: sequential recurrence, T_CHUNK timesteps per grid step.
# --------------------------------------------------------------------------- #
def rnn_recurrence_kernel(xe_ref, h0_ref, whh_ref, b_ref, yh_ref, state_ref):
    """xe_ref   : (T_CHUNK, Bp, Hp)  pre-gathered input embeddings (rows of W_ih^T)
    h0_ref   : (Bp, Hp)           initial hidden state
    whh_ref  : (Hp, Hp)           W_hh^T
    b_ref    : (1, Hp)            b_ih + b_hh
    yh_ref   : (T_CHUNK, Bp, Hp)  per-step hidden states (output slab)
    state_ref: (Bp, Hp)           hidden-state carry; constant out block index ->
                                  resident in VMEM across the grid; final state output.
    """
    c = pl.program_id(0)

    @pl.when(c == 0)
    def _():
        state_ref[...] = h0_ref[...]

    def step(t, h):
        h_new = jnp.tanh(
            xe_ref[t]
            + jnp.dot(h, whh_ref[...], preferred_element_type=jnp.float32)
            + b_ref[...]
        )
        yh_ref[t] = h_new
        return h_new

    state_ref[...] = jax.lax.fori_loop(0, xe_ref.shape[0], step, state_ref[...])


# --------------------------------------------------------------------------- #
# Kernel 2: output projection (T*B, H) @ (H, V) + b -- fully parallel grid.
# --------------------------------------------------------------------------- #
def linear_kernel(a_ref, w_ref, b_ref, o_ref):
    o_ref[...] = (
        jnp.dot(a_ref[...], w_ref[...], preferred_element_type=jnp.float32)
        + b_ref[...]
    )


def rnn_model_forward(inputs, state, params, t_chunk=4):
    """inputs: (B, T) int32 token ids.  state: (1, B, H) float32."""
    wih, whh, b_comb, wout, bout = params
    V, H = wih.shape
    B, T = inputs.shape
    if T % t_chunk != 0:
        t_chunk = T  # fallback: single chunk

    Bp = _round_up(max(B, 8), 8)
    Hp = _round_up(H, 128)
    Vp = _round_up(V, 128)

    # Input path: token-id gather replaces one_hot(inputs.T) @ W_ih^T (same math,
    # no (T, B, V) array and no per-step input matmul).
    x_emb = jnp.take(wih, inputs.T, axis=0)                       # (T, B, H)
    x_emb = jnp.pad(x_emb, ((0, 0), (0, Bp - B), (0, Hp - H)))    # (T, Bp, Hp)

    h0 = jnp.pad(state[0], ((0, Bp - B), (0, Hp - H)))            # (Bp, Hp)
    whh_p = jnp.pad(whh, ((0, Hp - H), (0, Hp - H)))              # (Hp, Hp)
    b_p = jnp.pad(b_comb, ((0, 0), (0, Hp - H)))                  # (1, Hp)
    wout_p = jnp.pad(wout, ((0, Hp - H), (0, Vp - V)))            # (Hp, Vp)
    bout_p = jnp.pad(bout, ((0, 0), (0, Vp - V)))                 # (1, Vp)

    num_chunks = T // t_chunk

    rec_cost = pl.CostEstimate(
        flops=2 * T * Bp * Hp * Hp,
        transcendentals=T * Bp * Hp,
        bytes_accessed=4 * (2 * T * Bp * Hp + Hp * Hp + 2 * Bp * Hp + Hp),
    )

    yh, state_out = pl.pallas_call(
        rnn_recurrence_kernel,
        out_shape=(
            jax.ShapeDtypeStruct((T, Bp, Hp), jnp.float32),   # hidden states Y
            jax.ShapeDtypeStruct((Bp, Hp), jnp.float32),      # final hidden state
        ),
        grid_spec=pltpu.PrefetchScalarGridSpec(
            num_scalar_prefetch=0,
            grid=(num_chunks,),
            in_specs=[
                pl.BlockSpec((t_chunk, Bp, Hp), lambda c: (c, 0, 0)),  # X_emb chunk
                pl.BlockSpec((Bp, Hp), lambda c: (0, 0)),              # h0
                pl.BlockSpec((Hp, Hp), lambda c: (0, 0)),              # W_hh^T
                pl.BlockSpec((1, Hp), lambda c: (0, 0)),               # bias
            ],
            out_specs=[
                pl.BlockSpec((t_chunk, Bp, Hp), lambda c: (c, 0, 0)),
                pl.BlockSpec((Bp, Hp), lambda c: (0, 0)),
            ],
        ),
        compiler_params=pltpu.CompilerParams(
            dimension_semantics=("arbitrary",),        # recurrence: strictly sequential
            vmem_limit_bytes=32 * 1024 * 1024,
        ),
        cost_estimate=rec_cost,
    )(x_emb, h0, whh_p, b_p)

    # Output projection as a separate, parallel, lane-dense matmul kernel.
    M = T * Bp
    a = yh.reshape(M, Hp)
    tm = _pick_tile(M, (256, 128, 64, 32, 16, 8))
    tn = _pick_tile(Vp, (512, 256, 128))

    proj_cost = pl.CostEstimate(
        flops=2 * M * Hp * Vp,
        transcendentals=0,
        bytes_accessed=4 * (M * Hp + Hp * Vp + M * Vp + Vp),
    )

    out_full = pl.pallas_call(
        linear_kernel,
        out_shape=jax.ShapeDtypeStruct((M, Vp), jnp.float32),
        grid_spec=pltpu.PrefetchScalarGridSpec(
            num_scalar_prefetch=0,
            grid=(M // tm, Vp // tn),
            in_specs=[
                pl.BlockSpec((tm, Hp), lambda i, j: (i, 0)),   # Y rows
                pl.BlockSpec((Hp, tn), lambda i, j: (0, j)),   # W_out^T
                pl.BlockSpec((1, tn), lambda i, j: (0, j)),    # b_out
            ],
            out_specs=pl.BlockSpec((tm, tn), lambda i, j: (i, j)),
        ),
        compiler_params=pltpu.CompilerParams(
            dimension_semantics=("parallel", "parallel"),   # megacore-shardable (v7x)
            vmem_limit_bytes=32 * 1024 * 1024,
        ),
        cost_estimate=proj_cost,
    )(a, wout_p, bout_p)

    # Strip padding: rows of padded batch entries and padded vocab columns.
    output = out_full.reshape(T, Bp, Vp)[:, :B, :V].reshape(T * B, V)
    new_state = state_out[:B, :H][None, :, :]
    return output, new_state


def init_params(key, vocab_size, num_hiddens):
    """Deterministic init matching PyTorch nn.RNN / nn.Linear shapes.
    Weights are stored pre-transposed as (in_features, out_features)."""
    k = jax.random.split(key, 6)
    s = 1.0 / np.sqrt(num_hiddens)
    wih = jax.random.uniform(k[0], (vocab_size, num_hiddens), jnp.float32, -s, s)   # W_ih^T
    whh = jax.random.uniform(k[1], (num_hiddens, num_hiddens), jnp.float32, -s, s)  # W_hh^T
    b_ih = jax.random.uniform(k[2], (num_hiddens,), jnp.float32, -s, s)
    b_hh = jax.random.uniform(k[3], (num_hiddens,), jnp.float32, -s, s)
    wout = jax.random.uniform(k[4], (num_hiddens, vocab_size), jnp.float32, -s, s)  # W_out^T
    bout = jax.random.uniform(k[5], (vocab_size,), jnp.float32, -s, s)
    return wih, whh, (b_ih + b_hh)[None, :], wout, bout[None, :]


def reference_forward(inputs, state, params):
    """Pure-JAX reference of the PyTorch forward (one-hot formulation)."""
    wih, whh, b_comb, wout, bout = params
    V = wih.shape[0]
    x = jax.nn.one_hot(inputs.T, V, dtype=jnp.float32)      # (T, B, V)
    h = state[0]

    def step(h, x_t):
        h_new = jnp.tanh(x_t @ wih + h @ whh + b_comb[0])
        return h_new, h_new

    h_final, ys = jax.lax.scan(step, h, x)
    out = ys.reshape((-1, ys.shape[-1])) @ wout + bout[0]
    return out, h_final[None]


if __name__ == "__main__":
    vocab_size = 32
    num_hiddens = 32
    batch = 2
    seq = 8

    key = jax.random.PRNGKey(0)
    k_tok, k_par = jax.random.split(key)
    params = init_params(k_par, vocab_size, num_hiddens)

    inputs = jax.random.randint(k_tok, (batch, seq), 0, vocab_size, dtype=jnp.int32)
    # begin_state: zeros of shape (num_directions * num_layers, B, H) = (1, B, H)
    state = jnp.zeros((1, batch, num_hiddens), jnp.float32)

    out, new_state = rnn_model_forward(inputs, state, params, t_chunk=4)
    out = jax.block_until_ready(out)
    new_state = jax.block_until_ready(new_state)

    ref_out, ref_state = reference_forward(inputs, state, params)
    assert out.shape == (seq * batch, vocab_size)
    assert new_state.shape == (1, batch, num_hiddens)
    np.testing.assert_allclose(np.asarray(out), np.asarray(ref_out), rtol=1e-4, atol=1e-4)
    np.testing.assert_allclose(np.asarray(new_state), np.asarray(ref_state), rtol=1e-4, atol=1e-4)

    print("KERNEL_OK")
</pallas_src>

<mosaic_0001>
module attributes {stable_mosaic.version = 11 : i64} {
  func.func @rnn_recurrence_kernel(%arg0: i32, %arg1: memref<4x8x128xf32, #tpu.memory_space<vmem>>, %arg2: memref<8x128xf32, #tpu.memory_space<vmem>>, %arg3: memref<128x128xf32, #tpu.memory_space<vmem>>, %arg4: memref<1x128xf32, #tpu.memory_space<vmem>>, %arg5: memref<4x8x128xf32, #tpu.memory_space<vmem>>, %arg6: memref<8x128xf32, #tpu.memory_space<vmem>>) attributes {dimension_semantics = [#tpu.dimension_semantics<arbitrary>], iteration_bounds = array<i64: 2>, scalar_prefetch = 0 : i64, scratch_operands = 0 : i64, tpu.core_type = #tpu.core_type<tc>, window_params = [{transform_indices = @transform_0, window_bounds = array<i64: 4, 8, 128>}, {pipeline_mode = #tpu.pipeline_mode<synchronous>, transform_indices = @transform_1, window_bounds = array<i64: 8, 128>}, {pipeline_mode = #tpu.pipeline_mode<synchronous>, transform_indices = @transform_2, window_bounds = array<i64: 128, 128>}, {pipeline_mode = #tpu.pipeline_mode<synchronous>, transform_indices = @transform_3, window_bounds = array<i64: 1, 128>}, {transform_indices = @transform_4, window_bounds = array<i64: 4, 8, 128>}, {pipeline_mode = #tpu.pipeline_mode<synchronous>, transform_indices = @transform_5, window_bounds = array<i64: 8, 128>}]} {
    %c0_i32 = arith.constant 0 : i32
    %0 = arith.cmpi eq, %arg0, %c0_i32 : i32
    %1 = arith.extui %0 : i1 to i32
    %c0_i32_0 = arith.constant 0 : i32
    %2 = arith.cmpi ne, %1, %c0_i32_0 : i32
    scf.if %2 {
      %c0_6 = arith.constant 0 : index
      %c0_7 = arith.constant 0 : index
      %7 = vector.load %arg2[%c0_6, %c0_7] : memref<8x128xf32, #tpu.memory_space<vmem>>, vector<8x128xf32>
      %c0_8 = arith.constant 0 : index
      %c0_9 = arith.constant 0 : index
      %8 = vector.load %arg6[%c0_8, %c0_9] : memref<8x128xf32, #tpu.memory_space<vmem>>, vector<8x128xf32>
      tpu.vector_store %arg6[%c0_8, %c0_9], %7 {strides = array<i32>} : memref<8x128xf32, #tpu.memory_space<vmem>>, vector<8x128xf32>,
    } else {
    }
    %c0 = arith.constant 0 : index
    %c0_1 = arith.constant 0 : index
    %3 = vector.load %arg6[%c0, %c0_1] : memref<8x128xf32, #tpu.memory_space<vmem>>, vector<8x128xf32>
    %c0_i32_2 = arith.constant 0 : i32
    %c4_i32 = arith.constant 4 : i32
    %4 = arith.addi %c0_i32_2, %c4_i32 : i32
    %c1_i32 = arith.constant 1 : i32
    %5 = scf.for %arg7 = %c0_i32_2 to %4 step %c1_i32 iter_args(%arg8 = %3) -> (vector<8x128xf32>)  : i32 {
      %7 = arith.index_cast %arg7 : i32 to index
      %c0_6 = arith.constant 0 : index
      %c0_7 = arith.constant 0 : index
      %8 = vector.load %arg1[%7, %c0_6, %c0_7] : memref<4x8x128xf32, #tpu.memory_space<vmem>>, vector<1x8x128xf32>
      %9 = vector.shape_cast %8 : vector<1x8x128xf32> to vector<8x128xf32>
      %c0_8 = arith.constant 0 : index
      %c0_9 = arith.constant 0 : index
      %10 = vector.load %arg3[%c0_8, %c0_9] : memref<128x128xf32, #tpu.memory_space<vmem>>, vector<128x128xf32>
      %cst = arith.constant dense<0.000000e+00> : vector<8x128xf32>
      %11 = tpu.matmul %arg8, %10, %cst {dimension_numbers = #tpu.dot_dimension_numbers<[1], [0], [0], [1], [0, 0, 1, 1], [], []>} : vector<8x128xf32>, vector<128x128xf32>, vector<8x128xf32> -> vector<8x128xf32>
      %12 = arith.addf %9, %11 : vector<8x128xf32>
      %c0_10 = arith.constant 0 : index
      %c0_11 = arith.constant 0 : index
      %13 = vector.load %arg4[%c0_10, %c0_11] : memref<1x128xf32, #tpu.memory_space<vmem>>, vector<1x128xf32>
      %14 = vector.broadcast %13 : vector<1x128xf32> to vector<8x128xf32>
      %15 = arith.addf %12, %14 : vector<8x128xf32>
      %16 = math.tanh %15 : vector<8x128xf32>
      %17 = arith.index_cast %arg7 : i32 to index
      %c0_12 = arith.constant 0 : index
      %c0_13 = arith.constant 0 : index
      %18 = vector.load %arg5[%17, %c0_12, %c0_13] : memref<4x8x128xf32, #tpu.memory_space<vmem>>, vector<1x8x128xf32>
      %19 = vector.shape_cast %18 : vector<1x8x128xf32> to vector<8x128xf32>
      %20 = vector.shape_cast %16 : vector<8x128xf32> to vector<1x8x128xf32>
      tpu.vector_store %arg5[%17, %c0_12, %c0_13], %20 {strides = array<i32>} : memref<4x8x128xf32, #tpu.memory_space<vmem>>, vector<1x8x128xf32>,
      scf.yield %16 : vector<8x128xf32>
    }
    %c4_i32_3 = arith.constant 4 : i32
    %c0_4 = arith.constant 0 : index
    %c0_5 = arith.constant 0 : index
    %6 = vector.load %arg6[%c0_4, %c0_5] : memref<8x128xf32, #tpu.memory_space<vmem>>, vector<8x128xf32>
    tpu.vector_store %arg6[%c0_4, %c0_5], %5 {strides = array<i32>} : memref<8x128xf32, #tpu.memory_space<vmem>>, vector<8x128xf32>,
    return
  }
  func.func @transform_0(%arg0: i32) -> (i32, i32, i32) {
    %c0_i32 = arith.constant 0 : i32
    %c0_i32_0 = arith.constant 0 : i32
    %c0_i32_1 = arith.constant 0 : i32
    return %arg0, %c0_i32, %c0_i32_0 : i32, i32, i32
  }
  func.func @transform_1(%arg0: i32) -> (i32, i32) {
    %c0_i32 = arith.constant 0 : i32
    %c0_i32_0 = arith.constant 0 : i32
    %c0_i32_1 = arith.constant 0 : i32
    return %c0_i32, %c0_i32_0 : i32, i32
  }
  func.func @transform_2(%arg0: i32) -> (i32, i32) {
    %c0_i32 = arith.constant 0 : i32
    %c0_i32_0 = arith.constant 0 : i32
    %c0_i32_1 = arith.constant 0 : i32
    return %c0_i32, %c0_i32_0 : i32, i32
  }
  func.func @transform_3(%arg0: i32) -> (i32, i32) {
    %c0_i32 = arith.constant 0 : i32
    %c0_i32_0 = arith.constant 0 : i32
    %c0_i32_1 = arith.constant 0 : i32
    return %c0_i32, %c0_i32_0 : i32, i32
  }
  func.func @transform_4(%arg0: i32) -> (i32, i32, i32) {
    %c0_i32 = arith.constant 0 : i32
    %c0_i32_0 = arith.constant 0 : i32
    %c0_i32_1 = arith.constant 0 : i32
    return %arg0, %c0_i32, %c0_i32_0 : i32, i32, i32
  }
  func.func @transform_5(%arg0: i32) -> (i32, i32) {
    %c0_i32 = arith.constant 0 : i32
    %c0_i32_0 = arith.constant 0 : i32
    %c0_i32_1 = arith.constant 0 : i32
    return %c0_i32, %c0_i32_0 : i32, i32
  }
}

</mosaic_0001>

<bundles_post_ra>
// kernel: tpu_custom_call.1
= control target key start
LH: loop header
LB: loop body
LE: loop exit
PB: predicated region body
PF: predicated region fallthrough
CT: control target
= control target key end

     0   :  { %s1261_s0 = inlined_call_operand.hbm [shape: f32[8,8,128], index: 0, kind: input, shape index: {}]   ;;  %s1262_s1 = inlined_call_operand.hbm [shape: f32[8,128], index: 1, kind: input, shape index: {}]   ;;  %s1263_s2 = inlined_call_operand.hbm [shape: f32[128,128], index: 2, kind: input, shape index: {}]   ;;  %s1264_s3 = inlined_call_operand.vmem [shape: f32[1,128], index: 3, kind: input, shape index: {}]   ;;  %s1265_s4 = inlined_call_operand.hbm [shape: f32[8,8,128], index: 4, kind: output, shape index: {0}]   ;;  %s1266_s5 = inlined_call_operand.hbm [shape: f32[8,128], index: 5, kind: output, shape index: {1}]  }
   0x1   :  { %1273 = sst [smem:[#allocation16_spill]] %s1262_s1 }
   0x2   :  { %11 = vsyncpa [#allocation3], 0 }
   0x3   :  { %13 = vsyncpa [#allocation3 + $0x1], 0 }
   0x4   :  { %14 = vsyncpa [#allocation6], 0 }
   0x5   :  { %15 = vsyncpa [#allocation4], 0 }
   0x6   :  { %17 = vsyncpa [#allocation4 + $0x1], 0 }
   0x7   :  { %18 = vsyncpa [#allocation10], 0  ;;  %s973_s18 = smov 0   ;;  %s975_s19 = smov 0  }
   0x8   :  { %s977_s20 = smov 0   ;;  %s979_s21 = smov 0  }
   0x9 LB: > { %s994_s22 = sadd.s32 4294967295, %s921_s21   ;;  %s527_s23 = sadd.s32 4294967294, %s921_s21   ;;  %s921_s21 = sphi %s979_s21, %s1303_s21   ;;  %s917_s20 = sphi %s977_s20, %s1302_s20   ;;  %s913_s19 = sphi %s975_s19, %s1301_s19   ;;  %s909_s18 = sphi %s973_s18, %s1300_s18  }
   0xa   : > { %s998_s24 = sadd.s32 1, %s921_s21   ;;  %s31_s25 = sadd.s32 1, %s917_s20 }
   0xb   : > { %s28_s26 = ssub.s32 %s921_s21, %s998_s24  ;;  %p38_p0 = scmp.ne.s32.totalorder %s917_s20, %s913_s19 }
   0xc   : > { %p29_p1 = scmp.eq.s32.totalorder %s28_s26, 0  ;;  %p39_p2 = scmp.eq.s32.totalorder %s921_s21, 0 }
   0xd   : > { %p44_p3 = scmp.ne.s32.totalorder %s913_s19, %s909_s18  ;;  %p1267_p4 = scmp.eq.s32.totalorder %s994_s22, 0 }
   0xe   : > { %s1010_s27 = scalar_select %p29_p1, %s917_s20, %s31_s25  }
   0xf   : > { %p1012_p5 = por %p39_p2, %p38_p0  ;;  %p1018_p6 = por %p1267_p4, %p44_p3 }
  0x10   : > { %1274 = sst [smem:[#allocation15_spill]] %s1010_s27  ;;  %p1268_p7 = scmp.eq.s32.totalorder %s994_s22, 1 }
  0x11   : > { %s1276_s29 = scalar_select %p1018_p6, 1, 0 }
  0x12   : > { %p137_p8 = scmp.eq.s32.totalorder %s527_s23, 1  ;;  %p528_p9 = scmp.ge.s32.totalorder %s921_s21, 1 }
  0x13   : > { %p165_p10 = scmp.lt.s32.totalorder %s921_s21, 3  ;;  %p1027_p11 = por %p1268_p7, %p38_p0 }
  0x14   : > { %p1031_p12 = por %p137_p8, %p44_p3  ;;  %s931_s8 = smov [#allocation5]  }
  0x15   : > { %s1277_s30 = scalar_select %p1027_p11, 1, 0 }
  0x16   : > { %s1278_s6 = scalar_select %p1031_p12, 1, 0 }
  0x17   : > { %p1035_p13 = pnand %p528_p9, %p165_p10  ;;  %s178_s9 = sshll.u32 %s931_s8, 4  ;;  %s179_s9 = int_to_ptr.vmem [resolvable:$true] %s178_s9 }
  0x18   : > { %p661_p0 = scmp.lt.s32.totalorder %s921_s21, 2  ;;  %p1280_p7 = scmp.eq.s32.totalorder %s994_s22, 0 }
  0x19   : > { %s1279_s7 = scalar_select %p1035_p13, 1, 0 }
  0x1a   : > { %p644_p4 = pneg %p1035_p13  ;;  %p1052_p3 = pnand %p661_p0, %p1012_p5 }
  0x1b   : > { %s932_s12 = smov [#allocation7]   ;;  %s1283_s1 = sld [smem:[#allocation16_spill]] }
  0x1c   : > { %p1046_p6 = pnand %p644_p4, %p1280_p7  ;;  %s188_s13 = sshll.u32 %s932_s12, 4  ;;  %s1056_s13 = int_to_ptr.vmem [resolvable:$true] %s188_s13 }
  0x1d   : > { %s1282_s11 = scalar_select %p1052_p3, 1, 0 }
  0x1e   : > { %p729_p7 = pneg %p1046_p6 }
  0x21   : > { %s727_s16 = scalar_lea.hbm %s1283_s1, 128 }
  0x22   : > { %p728_p4 = scmp.ne.s32.totalorder %s1283_s1, %s727_s16  ;;  %p734_p9 = scmp.lt.u32.totalorder %s727_s16, %s1283_s1 }
  0x24   : > { %p730_p5 = pnand %p729_p7, %p728_p4 }
  0x26   : > { %p731_p8 = pneg %p730_p5 }
  0x28   : > { %p736_p10 = pnand %p734_p9, %p731_p8 }
  0x2a   : > { %739 = shalt.err (!%p736_p10)
}
  0x2b   : > { %s740_s28 = scalar_lea.vmem %s179_s9, 128  ;;  %p748_p12 = scmp.lt.s32.totalorder %s179_s9, %s179_s9 }
  0x2c   : > { %p741_p0 = scmp.ne.s32.totalorder %s179_s9, %s740_s28  ;;  %p749_p11 = scmp.lt.s32.totalorder %s740_s28, %s740_s28 }
  0x2e   : > { %p743_p2 = pnand %p741_p0, %p729_p7  ;;  %p750_p13 = por %p749_p11, %p748_p12 }
  0x30   : > { %p744_p1 = pneg %p743_p2 }
  0x32   : > { %p751_p3 = pnand %p750_p13, %p744_p1 }
  0x34   : > { %754 = shalt.err (!%p751_p3)
}
  0x35   : > { %647 = dma.hbm_to_vmem [thread:$0]  (!%p1046_p6), %s1283_s1, 128, %s179_s9, [#allocation6]  }
  0x36   : > { %s205_s14 = sand.u32 1, %s917_s20   ;;  %s755_s17 = scalar_lea.hbm %s1263_s2, 2048 }
  0x37   : > { %p756_p2 = scmp.ne.s32.totalorder %s1263_s2, %s755_s17  ;;  %p762_p13 = scmp.lt.u32.totalorder %s755_s17, %s1263_s2 }
  0x39   : > { %p758_p11 = pnand %p756_p2, %p729_p7 }
  0x3b   : > { %p759_p12 = pneg %p758_p11 }
  0x3d   : > { %p764_p1 = pnand %p762_p13, %p759_p12 }
  0x3f   : > { %767 = shalt.err (!%p764_p1)
}
  0x40   : > { %s768_s9 = scalar_lea.vmem %s1056_s13, 2048  ;;  %p776_p8 = scmp.lt.s32.totalorder %s1056_s13, %s1056_s13 }
  0x41   : > { %p769_p3 = scmp.ne.s32.totalorder %s1056_s13, %s768_s9  ;;  %p777_p9 = scmp.lt.s32.totalorder %s768_s9, %s768_s9 }
  0x43   : > { %p771_p4 = pnand %p769_p3, %p729_p7  ;;  %p778_p10 = por %p777_p9, %p776_p8 }
  0x45   : > { %p772_p5 = pneg %p771_p4 }
  0x47   : > { %p779_p0 = pnand %p778_p10, %p772_p5 }
  0x49   : > { %782 = shalt.err (!%p779_p0)
}
  0x4a   : > { %s933_s8 = smov 128   ;;  %s934_s12 = smov 8  }
  0x4b   : > { %650 = dma.hbm_to_vmem [thread:$0]  (!%p1046_p6), %s1263_s2, 2048, %s1056_s13, [#allocation6], %s933_s8, %s933_s8, %s934_s12  }
  0x4c   : > { %s532_s17 = sshll.u32 %s205_s14, 5  ;;  %s550_s23 = sshll.u32 %s921_s21, 9 }
  0x4d   : > { %s1113_s28 = scalar_lea.hbm %s1261_s0, %s550_s23  ;;  %s209_s9 = scalar_lea.vmem [#allocation2], %s532_s17 }
  0x4e   : > { %s216_s10 = sshll.u32 %s209_s9, 4  ;;  %s1117_s1 = scalar_lea.sflag [#allocation3], %s205_s14  ;;  %s1115_s10 = int_to_ptr.vmem [resolvable:$true] %s216_s10 }
  0x4f   : > { %s783_s27 = scalar_lea.hbm %s1113_s28, 512  ;;  %p1284_p6 = scmp.ne.s32.totalorder %s1282_s11, 0 }
  0x50   : > { %p784_p7 = scmp.ne.s32.totalorder %s1113_s28, %s783_s27  ;;  %s788_s16 = scalar_lea.hbm %s1261_s0, 1024 }
  0x51   : > { %p785_p2 = pneg %p1284_p6  ;;  %p789_p13 = scmp.lt.u32.totalorder %s1113_s28, %s1261_s0 }
  0x52   : > { %p790_p1 = scmp.lt.u32.totalorder %s788_s16, %s783_s27  ;;  %p792_p4 = scmp.lt.u32.totalorder %s783_s27, %s1113_s28 }
  0x53   : > { %p786_p11 = pnand %p785_p2, %p784_p7 }
  0x54   : > { %p791_p3 = por %p790_p1, %p789_p13 }
  0x55   : > { %p787_p12 = pneg %p786_p11 }
  0x56   : > { %p793_p5 = por %p792_p4, %p791_p3 }
  0x58   : > { %p794_p8 = pnand %p793_p5, %p787_p12 }
  0x5a   : > { %797 = shalt.err (!%p794_p8)
}
  0x5b   : > { %s798_s14 = scalar_lea.vmem %s1115_s10, 512  ;;  %s935_s17 = smov [#allocation2]  }
  0x5c   : > { %p799_p9 = scmp.ne.s32.totalorder %s1115_s10, %s798_s14  ;;  %s803_s26 = sshll.u32 %s935_s17, 4  ;;  %s804_s26 = int_to_ptr.vmem [resolvable:$false] %s803_s26 }
  0x5d   : > { %s805_s9 = scalar_lea.vmem %s804_s26, 1024  ;;  %p806_p7 = scmp.lt.s32.totalorder %s1115_s10, %s804_s26 }
  0x5e   : > { %p801_p10 = pnand %p799_p9, %p785_p2  ;;  %p807_p11 = scmp.lt.s32.totalorder %s805_s9, %s798_s14 }
  0x60   : > { %p802_p0 = pneg %p801_p10  ;;  %p808_p13 = por %p807_p11, %p806_p7 }
  0x62   : > { %p809_p1 = pnand %p808_p13, %p802_p0 }
  0x64   : > { %812 = shalt.err (!%p809_p1)
}
  0x65   : > { %654 = dma.hbm_to_vmem [thread:$0]  (!%p1284_p6), %s1113_s28, 512, %s1115_s10, %s1117_s1, %s933_s8, %s933_s8, %s934_s12  }
  0x66   : > { %p1285_p2 = scmp.ne.s32.totalorder %s1279_s7, 0 }
  0x67   : > { %s1151_s27 = sand.u32 (!%p1285_p2), 1, %s913_s19   ;;  %p1286_p12 = scmp.ne.s32.totalorder (!%p1285_p2), %s1276_s29, 0 }
  0x68   : > { %228 = sbr.rel (%p1285_p2) target bundleno = 429 (0x1ad), region = 36  ;;  %s536_s13 = sshll.u32 (!%p1285_p2), %s1151_s27, 5 }
  0x69   : > { %s231_s15 = scalar_lea.sflag (!%p1285_p2), [#allocation3], %s1151_s27  ;;  %s1155_s16 = scalar_lea.vmem (!%p1285_p2), [#allocation2], %s536_s13 }
  0x6f   : > { %892 = dma.done.wait (%p1286_p12), %s231_s15, 512  }
  0x70   : > { %894 = vsyncadd (%p1286_p12), %s231_s15, 4294966784  ;;  %p1287_p6 = scmp.eq.s32.totalorder %s994_s22, 0 }
  0x72   : > { %896 = dma.done.wait (%p1287_p6), [#allocation6], 2176   ;;  %p1288_p3 = pmov %p1287_p6 }
  0x73   : > { %s1165_s1 = scalar_lea.vmem [#allocation8], %s536_s13  ;;  %p1289_p4 = scmp.ne.s32.totalorder %s994_s22, 0 }
  0x74   : > { %898 = vsyncadd (%p1288_p3), [#allocation6], 4294965120  ;;  %v275_v0 = vld [vmem:[#allocation5] sm:$0xff] (!%p1289_p4) }
  0x75   : > { %274 = sbr.rel (%p1289_p4) target bundleno = 124 (0x7c), region = 52  ;;  %276 = vst [vmem:[#allocation9] sm:$0xff] (!%p1289_p4), %v275_v0 }
  0x7c PF: > { %v277_v1 = vld [vmem:[#allocation9] sm:$0xff]   ;;  %s1171_s7 = smov 0  }
  0x7d LB: >> { %v288_v2 = vld [vmem:[#allocation7] sm:$0xff]  ;;  %v289_v3 = vld [vmem:[#allocation7 + $0x8] sm:$0xff]  ;;  %v290_v4 = vld [vmem:[#allocation7 + $0x10] sm:$0xff]  ;;  %v936_v5 = vmov 0.0|0.0   ;;  %vm937_vm0 = vmmov 0   ;;  %v938_v8 = vmov 0.0   ;;  %s929_s7 = sphi %s1171_s7, %s283_s7   ;;  %v925_v1 = vphi %v277_v1, %v1290_v1  }
  0x7e   : >> { %604 = vmatprep.subr.bf16.mxu0 %v936_v5  ;;  %v605_v6 = vpack.c.bf16 %v289_v3, %v288_v2  ;;  %v291_v7 = vld [vmem:[#allocation7 + $0x18] sm:$0xff]  ;;  %601 = vmatprep.mubr.msk.f32.mxu0 %vm937_vm0, %v938_v8  ;;  %v292_v10 = vld [vmem:[#allocation7 + $0x20] sm:$0xff]  ;;  %v293_v11 = vld [vmem:[#allocation7 + $0x28] sm:$0xff]  ;;  %s541_s29 = sshll.u32 %s929_s7, 3  ;;  %s283_s7 = sadd.s32 1, %s929_s7  }
  0x7f   : >> { %v608_v9 = vpack.c.bf16 %v291_v7, %v290_v4  ;;  %v611_v12 = vpack.c.bf16 %v293_v11, %v292_v10  ;;  %v294_v13 = vld [vmem:[#allocation7 + $0x30] sm:$0xff]  ;;  %v295_v14 = vld [vmem:[#allocation7 + $0x38] sm:$0xff]  ;;  %v296_v16 = vld [vmem:[#allocation7 + $0x40] sm:$0xff]  ;;  %s286_s11 = scalar_lea.vmem %s1155_s16, %s541_s29 [#allocation2]  ;;  %s384_s28 = scalar_lea.vmem %s1165_s1, %s541_s29 [#allocation8] }
  0x80   : >> { %606 = vmatpush3.bf16.msra.mxu0 %v605_v6  ;;  %v614_v15 = vpack.c.bf16 %v295_v14, %v294_v13  ;;  %v297_v17 = vld [vmem:[#allocation7 + $0x48] sm:$0xff]  ;;  %v298_v19 = vld [vmem:[#allocation7 + $0x50] sm:$0xff]  ;;  %v299_v20 = vld [vmem:[#allocation7 + $0x58] sm:$0xff]  ;;  %p280_p5 = scmp.ge.s32.totalorder %s283_s7, 4  }
  0x81   : >> { %607 = vmatprep.subr.bf16.mxu0 %v936_v5  ;;  %v617_v18 = vpack.c.bf16 %v297_v17, %v296_v16  ;;  %v620_v21 = vpack.c.bf16 %v299_v20, %v298_v19  ;;  %v300_v22 = vld [vmem:[#allocation7 + $0x60] sm:$0xff]  ;;  %v301_v23 = vld [vmem:[#allocation7 + $0x68] sm:$0xff]  ;;  %v302_v25 = vld [vmem:[#allocation7 + $0x70] sm:$0xff]  ;;  %s551_s10 = sshll.u32 (%p280_p5), %s994_s22, 9  ;;  %s401_s17 = sshll.u32 (%p280_p5), %s1165_s1, 4  ;;  %s1195_s17 = int_to_ptr.vmem [resolvable:$true] %s401_s17 }
  0x82   : >> { %v623_v24 = vpack.c.bf16 %v301_v23, %v300_v22  ;;  %v303_v26 = vld [vmem:[#allocation7 + $0x78] sm:$0xff]  ;;  %s1192_s14 = scalar_lea.hbm (%p280_p5), %s1265_s4, %s551_s10  ;;  %s388_s26 = scalar_lea.sflag (%p280_p5), [#allocation4], %s1151_s27 }
  0x83   : >> { %v626_v27 = vpack.c.bf16 %v303_v26, %v302_v25  ;;  %v287_v28 = vld [vmem:[%s286_s11] sm:$0xff]  ;;  %s813_s9 = scalar_lea.vmem (%p280_p5), %s1195_s17, 512  ;;  %p1291_p9 = scmp.ne.s32.totalorder (%p280_p5), %s1277_s30, 0 }
  0x84   : >> { %609 = vmatpush3.bf16.msra.mxu0 %v608_v9  ;;  %v542_v30 = vld [vmem:[%s1264_s3] ss:$0 sm:$0xff]  ;;  %p814_p8 = scmp.ne.s32.totalorder (%p280_p5), %s1195_s17, %s813_s9  ;;  %s939_s13 = smov (%p280_p5), [#allocation8]  }
  0x85   : >> { %610 = vmatprep.subr.bf16.mxu0 %v936_v5  ;;  %s817_s15 = sshll.u32 (%p280_p5), %s939_s13, 4  ;;  %s818_s15 = int_to_ptr.vmem [resolvable:$false] %s817_s15 }
  0x86   : > { %p815_p10 = pnand (%p280_p5), %p814_p8, %p1291_p9  ;;  %s819_s16 = scalar_lea.vmem (%p280_p5), %s818_s15, 1024 }
  0x87   : > { %p820_p7 = scmp.lt.s32.totalorder (%p280_p5), %s1195_s17, %s818_s15  ;;  %p821_p11 = scmp.lt.s32.totalorder (%p280_p5), %s819_s16, %s813_s9 }
  0x88   : >> { %612 = vmatpush3.bf16.msra.mxu0 %v611_v12  ;;  %p816_p0 = pneg (%p280_p5), %p815_p10 }
  0x89   : >> { %613 = vmatprep.subr.bf16.mxu0 %v936_v5  ;;  %p822_p13 = por (%p280_p5), %p821_p11, %p820_p7 }
  0x8b   : > { %p823_p1 = pnand (%p280_p5), %p822_p13, %p816_p0 }
  0x8c   : >> { %615 = vmatpush3.bf16.msra.mxu0 %v614_v15 }
  0x8d   : >> { %616 = vmatprep.subr.bf16.mxu0 %v936_v5 }
  0x90   : >> { %618 = vmatpush3.bf16.msra.mxu0 %v617_v18 }
  0x91   : >> { %619 = vmatprep.subr.bf16.mxu0 %v936_v5 }
  0x94   : >> { %621 = vmatpush3.bf16.msra.mxu0 %v620_v21 }
  0x95   : >> { %622 = vmatprep.subr.bf16.mxu0 %v936_v5 }
  0x98   : >> { %624 = vmatpush3.bf16.msra.mxu0 %v623_v24 }
  0x99   : >> { %625 = vmatprep.subr.bf16.mxu0 %v936_v5 }
  0x9c   : >> { %627 = vmatpush3.bf16.msra.mxu0 %v626_v27 }
  0x9f   : >> { %602 = vmatmul.mubr.f32.vlgmr.msra.gmra.mrb[0].mxu0 %v925_v1 }
 0x172   : >> { %v370_v29 = vpop.f32.mrb[0].mxu0 }
 0x173   : >> { %v374_v31 = vadd.f32 %v370_v29, %v287_v28  ;;  %v603_v32 = vpop.f32.mrb[1].mxu0 }
 0x175   : >> { %v382_v33 = vadd.f32 %v542_v30, %v374_v31 }
 0x177   : >> { %725 = vtanh.f32 %v382_v33 }
 0x17c   : > { %282 = sbr.rel (!%p280_p5) target bundleno = 125 (0x7d), region = 110 }
 0x181   : >> { %v726_v34 = vpop.eup %725  }
 0x182   : >> { %385 = vst [vmem:[%s384_s28] sm:$0xff] %v726_v34  ;;  %v1290_v1 = vmov %v726_v34  ;;  %386 = vst [vmem:[#allocation9] sm:$0xff] (%p280_p5), %v726_v34 }
 0x183   : > { %826 = shalt.err (!%p823_p1)
}
 0x184   : > { %s827_s1 = scalar_lea.hbm %s1192_s14, 512  ;;  %s831_s11 = scalar_lea.hbm %s1265_s4, 1024 }
 0x185   : > { %p828_p2 = scmp.ne.s32.totalorder %s1192_s14, %s827_s1  ;;  %p832_p3 = scmp.lt.u32.totalorder %s1192_s14, %s1265_s4 }
 0x186   : > { %p833_p4 = scmp.lt.u32.totalorder %s831_s11, %s827_s1  ;;  %p835_p8 = scmp.lt.u32.totalorder %s827_s1, %s1192_s14 }
 0x187   : > { %p829_p12 = pnand %p828_p2, %p1291_p9 }
 0x188   : > { %p834_p5 = por %p833_p4, %p832_p3 }
 0x189   : > { %p830_p6 = pneg %p829_p12 }
 0x18a   : > { %p836_p10 = por %p835_p8, %p834_p5 }
 0x18c   : > { %p837_p0 = pnand %p836_p10, %p830_p6 }
 0x18e   : > { %840 = shalt.err (!%p837_p0)
}
 0x18f   : > { %s940_s28 = smov 128   ;;  %s941_s10 = smov 8  }
 0x190   : > { %638 = dma.vmem_to_hbm [thread:$0]  (%p1291_p9), %s1195_s17, 512, %s1192_s14, %s388_s26, %s940_s28, %s940_s28, %s941_s10  }
 0x191   : > { %s942_s23 = smov [#allocation9]   ;;  %p1292_p11 = scmp.eq.s32.totalorder %s994_s22, 1 }
 0x192   : > { %s415_s25 = sshll.u32 %s942_s23, 4  ;;  %s416_s25 = int_to_ptr.vmem [resolvable:$true] %s415_s25 }
 0x193   : > { %s841_s9 = scalar_lea.vmem %s416_s25, 128  ;;  %p848_p2 = scmp.lt.s32.totalorder %s416_s25, %s416_s25 }
 0x194   : > { %p842_p7 = scmp.ne.s32.totalorder %s416_s25, %s841_s9  ;;  %p849_p12 = scmp.lt.s32.totalorder %s841_s9, %s841_s9 }
 0x196   : > { %p843_p13 = pnand %p842_p7, %p1292_p11  ;;  %p850_p6 = por %p849_p12, %p848_p2 }
 0x198   : > { %p844_p1 = pneg %p843_p13 }
 0x19a   : > { %p851_p3 = pnand %p850_p6, %p844_p1 }
 0x19c   : > { %854 = shalt.err (!%p851_p3)
}
 0x19d   : > { %s855_s30 = scalar_lea.hbm %s1266_s5, 128  ;;  %p1293_p4 = pmov %p1292_p11 }
 0x19e   : > { %p856_p9 = scmp.ne.s32.totalorder %s1266_s5, %s855_s30  ;;  %p861_p10 = scmp.lt.u32.totalorder %s855_s30, %s1266_s5 }
 0x1a0   : > { %p857_p5 = pnand %p856_p9, %p1293_p4 }
 0x1a2   : > { %p858_p8 = pneg %p857_p5 }
 0x1a4   : > { %p863_p0 = pnand %p861_p10, %p858_p8 }
 0x1a6   : > { %866 = shalt.err (!%p863_p0)
}
 0x1a7   : > { %p1294_p7 = pmov %p1293_p4  ;;  %p1295_p11 = pmov %p1293_p4 }
 0x1a9   : > { %640 = dma.vmem_to_hbm [thread:$0]  (%p1294_p7), %s416_s25, 128, %s1266_s5, [#allocation10]  }
 0x1aa   : > { %900 = dma.done.wait (%p1295_p11), [#allocation10], 128   ;;  %p1296_p13 = pmov %p1293_p4 }
 0x1ac   : > { %902 = vsyncadd (%p1296_p13), [#allocation10], 4294967168 }
 0x1ad PF: > { %s431_s7 = sand.u32 1, %s909_s18   ;;  %p1297_p1 = scmp.ne.s32.totalorder %s1278_s6, 0 }
 0x1ae   : > { %p1298_p2 = scmp.ge.s32.totalorder %s921_s21, 2  ;;  %s432_s29 = scalar_lea.sflag [#allocation4], %s431_s7 }
 0x1b0   : > { %p656_p12 = pnand %p1298_p2, %p1297_p1 }
 0x1b2   : > { %904 = dma.done.wait (!%p656_p12), %s432_s29, 512  }
 0x1b3   : > { %906 = vsyncadd (!%p656_p12), %s432_s29, 4294966784  ;;  %s1299_s11 = sld [smem:[#allocation15_spill]]  ;;  %p21_p6 = scmp.ge.s32.totalorder %s998_s24, 4  }
 0x1b4   : > { %s1300_s18 = smov %s913_s19  ;;  %s1301_s19 = smov %s917_s20 }
 0x1b5   : > { %s1303_s21 = smov %s998_s24  ;;  %23 = sbr.rel (!%p21_p6) target bundleno = 9 (0x9), region = 121 }
 0x1b9   : > { %s1302_s20 = smov %s1299_s11 }
 0x1bc   :  { %437 = vsyncpa [#allocation3], 1 }
 0x1bd   :  { %439 = vsyncpa [#allocation3 + $0x1], 1 }
 0x1be   :  { %440 = vsyncpa [#allocation6], 1 }
 0x1bf   :  { %441 = vsyncpa [#allocation4], 1 }
 0x1c0   :  { %443 = vsyncpa [#allocation4 + $0x1], 1 }
 0x1c1   :  { %444 = vsyncpa [#allocation10], 1 }

</bundles_post_ra>
